<compile_context>
chip_gen: v6e
topology: v6e:2x2x1
jax: 0.10.0
libtpu: 0.0.40
codegen_flags: <defaults>
</compile_context>

<pallas_src>
import functools

import jax
import jax.numpy as jnp
import numpy as np
from jax.experimental import pallas as pl
from jax.experimental.pallas import tpu as pltpu

_LANE = 128
_SUBLANE = 8


def _sine_layer_kernel(x_ref, w_ref, b_ref, o_ref):
    # x: (TM, K), w: (K, TN) (pre-transposed), b: (1, TN).
    acc = jnp.dot(x_ref[...], w_ref[...], preferred_element_type=jnp.float32)
    o_ref[...] = jnp.sin(acc + b_ref[...]).astype(o_ref.dtype)


def prepare_sine_layer_params(weight, bias, omega_0=30.0, param_dtype=jnp.float32):
    """One-time parameter prep (call at init, NOT per forward).

    Folds omega_0 into W and b (in f32, then casts), transposes W to (K, N_pad)
    for a canonical MXU contraction, and pads out_features to a lane multiple
    (zero pad -> sin(0)=0 in pad columns).

    Returns (w_prepared (K, N_pad), b_prepared (1, N_pad) f32, n_out).

    param_dtype=jnp.bfloat16 is a supported fast path for large layers on
    v6e/v7x (f32 accumulation is kept inside the kernel).
    """
    n_out, k = weight.shape
    # 256-wide padding fills the 2x256x256 MXU on v6e/v7x for matmul-bound
    # layers; keep 128 for small (epilogue-bound) layers to avoid wasted sin.
    lane_mult = 256 if k >= 512 else _LANE
    n_pad = max(lane_mult, ((n_out + lane_mult - 1) // lane_mult) * lane_mult)

    w = (jnp.float32(omega_0) * weight.astype(jnp.float32)).T          # (K, n_out)
    b = jnp.float32(omega_0) * bias.astype(jnp.float32)                # (n_out,)
    if n_pad != n_out:
        w = jnp.pad(w, ((0, 0), (0, n_pad - n_out)))                   # zero pad
        b = jnp.pad(b, ((0, n_pad - n_out),))
    w = w.astype(param_dtype)
    b = b.reshape(1, n_pad).astype(jnp.float32)                        # bias stays f32
    return w, b, n_out


def _round_up(v, mult):
    return ((v + mult - 1) // mult) * mult


def _plan_tiles(m, k, n_pad, itemsize=4):
    """Pick (tm, tn, vmem_limit_bytes) against the actual chip's VMEM.

    Weight + bias are single-buffered (pl.Buffered(1)); x and out tiles are
    double-buffered by the default pipeline.
    """
    try:
        vmem_cap = int(pltpu.get_tpu_info().vmem_capacity_bytes)
    except Exception:
        vmem_cap = 64 << 20                       # conservative (v7x-safe) fallback
    vmem_limit = int(vmem_cap * 0.75)             # headroom for compiler scratch/sems
    budget = int(vmem_limit * 0.9)                # tiling budget stays under the limit

    # --- TN: largest lane-multiple divisor of n_pad whose (single-buffered)
    #     weight+bias tile fits in half the budget; else fall back to 128.
    r = n_pad // _LANE
    tn = _LANE
    for d in range(r, 0, -1):
        if r % d == 0:
            cand = d * _LANE
            if (k * cand + cand) * itemsize <= budget // 2:
                tn = cand
                break
    # TODO(synk): if even a 128-wide weight tile does not fit (enormous K),
    # add K-tiling with an f32 VMEM accumulator (matmul pattern P3).

    fixed = (k * tn + tn) * itemsize              # weight + bias, single-buffered
    per_row = 2 * (k + tn) * itemsize             # x + out tiles, double-buffered
    remaining = max(budget - fixed, budget // 4)
    tm = remaining // per_row
    tm = int(min(tm, 2048, m))
    if tm != m:
        tm = max(_SUBLANE, (tm // _SUBLANE) * _SUBLANE)
    tm = max(_SUBLANE, tm)

    # Keep >= 2 M-steps so ("parallel", ...) can shard across v7x's two TCs.
    if m >= 2 * _SUBLANE and pl.cdiv(m, tm) < 2:
        tm = max(_SUBLANE, _round_up(pl.cdiv(m, 2), _SUBLANE))

    return tm, tn, vmem_limit


def sine_layer_forward(x, w_prepared, b_prepared, n_out, *, slice_output=True):
    """x: (M, K); params from prepare_sine_layer_params. Returns (M, n_out)."""
    m, k = x.shape
    k_w, n_pad = w_prepared.shape
    assert k == k_w, (k, k_w)

    tm, tn, vmem_limit = _plan_tiles(m, k, n_pad, itemsize=4)
    gm = pl.cdiv(m, tm)
    gn = pl.cdiv(n_pad, tn)

    cost = pl.CostEstimate(
        flops=2 * m * k * n_pad,
        transcendentals=m * n_pad,
        bytes_accessed=(x.dtype.itemsize * m * k
                        + w_prepared.dtype.itemsize * n_pad * k
                        + b_prepared.dtype.itemsize * n_pad
                        + x.dtype.itemsize * m * n_pad),
    )

    out = pl.pallas_call(
        _sine_layer_kernel,
        out_shape=jax.ShapeDtypeStruct((m, n_pad), x.dtype),
        # N outer (slow), M inner (fast): the weight tile stays resident across
        # the whole M sweep, fetched only gn times.
        grid=(gn, gm),
        in_specs=[
            # streamed activation tile (double-buffered by default)
            pl.BlockSpec((tm, k), lambda j, i: (i, 0)),
            # resident weight / bias: single-buffered (no wasted double buffer)
            pl.BlockSpec((k, tn), lambda j, i: (0, j),
                         pipeline_mode=pl.Buffered(1)),
            pl.BlockSpec((1, tn), lambda j, i: (0, j),
                         pipeline_mode=pl.Buffered(1)),
        ],
        out_specs=pl.BlockSpec((tm, tn), lambda j, i: (i, j)),
        compiler_params=pltpu.CompilerParams(
            dimension_semantics=("parallel", "parallel"),
            vmem_limit_bytes=vmem_limit,
        ),
        cost_estimate=cost,
    )(x, w_prepared, b_prepared)

    if slice_output and n_out != n_pad:
        # TODO(synk): when chaining SIREN layers, keep the padded width flowing
        # into the next layer's K (pad that layer's weight rows to match) and
        # slice once at the network output; also fuse consecutive SineLayers
        # into one pallas_call to eliminate per-layer HBM round-trips.
        out = out[:, :n_out]
    return out


if __name__ == "__main__":
    # Module hyperparameters (SineLayer(in_features, out_features, is_first=True)).
    in_features = 16
    out_features = 32
    batch = 8
    omega_0 = 30.0
    is_first = True

    key = jax.random.PRNGKey(0)
    kx, kw, kb = jax.random.split(key, 3)

    # Deterministic SIREN init (matches init_weights for is_first=True).
    if is_first:
        w_bound = 1.0 / in_features
    else:
        w_bound = np.sqrt(6.0 / in_features) / omega_0
    weight = jax.random.uniform(
        kw, (out_features, in_features), minval=-w_bound, maxval=w_bound,
        dtype=jnp.float32)
    # nn.Linear default bias init: U(-1/sqrt(in_features), 1/sqrt(in_features)).
    b_bound = 1.0 / np.sqrt(in_features)
    bias = jax.random.uniform(
        kb, (out_features,), minval=-b_bound, maxval=b_bound, dtype=jnp.float32)

    x = jax.random.normal(kx, (batch, in_features), dtype=jnp.float32)

    # One-time param prep (omega folding + transpose + lane padding), then forward.
    w_prep, b_prep, n_out = prepare_sine_layer_params(weight, bias, omega_0)
    y = sine_layer_forward(x, w_prep, b_prep, n_out)
    y = jax.block_until_ready(y)

    # Pure-JAX reference check (original module semantics).
    y_ref = jnp.sin(omega_0 * (x @ weight.T + bias))
    np.testing.assert_allclose(np.asarray(y), np.asarray(y_ref), rtol=1e-5, atol=1e-5)

    print("KERNEL_OK")
</pallas_src>

<mosaic_0001>
module attributes {stable_mosaic.version = 11 : i64} {
  func.func @_sine_layer_kernel(%arg0: i32, %arg1: i32, %arg2: memref<8x16xf32, #tpu.memory_space<vmem>>, %arg3: memref<16x128xf32, #tpu.memory_space<vmem>>, %arg4: memref<1x128xf32, #tpu.memory_space<vmem>>, %arg5: memref<8x128xf32, #tpu.memory_space<vmem>>) attributes {dimension_semantics = [#tpu.dimension_semantics<parallel>, #tpu.dimension_semantics<parallel>], iteration_bounds = array<i64: 1, 1>, scalar_prefetch = 0 : i64, scratch_operands = 0 : i64, tpu.core_type = #tpu.core_type<tc>, window_params = [{transform_indices = @transform_0, window_bounds = array<i64: 8, 16>}, {pipeline_mode = #tpu.pipeline_mode<synchronous>, transform_indices = @transform_1, window_bounds = array<i64: 16, 128>}, {pipeline_mode = #tpu.pipeline_mode<synchronous>, transform_indices = @transform_2, window_bounds = array<i64: 1, 128>}, {transform_indices = @transform_3, window_bounds = array<i64: 8, 128>}]} {
    %c0 = arith.constant 0 : index
    %c0_0 = arith.constant 0 : index
    %0 = vector.load %arg2[%c0, %c0_0] : memref<8x16xf32, #tpu.memory_space<vmem>>, vector<8x16xf32>
    %c0_1 = arith.constant 0 : index
    %c0_2 = arith.constant 0 : index
    %1 = vector.load %arg3[%c0_1, %c0_2] : memref<16x128xf32, #tpu.memory_space<vmem>>, vector<16x128xf32>
    %cst = arith.constant dense<0.000000e+00> : vector<8x128xf32>
    %2 = tpu.matmul %0, %1, %cst {dimension_numbers = #tpu.dot_dimension_numbers<[1], [0], [0], [1], [0, 0, 1, 1], [], []>} : vector<8x16xf32>, vector<16x128xf32>, vector<8x128xf32> -> vector<8x128xf32>
    %c0_3 = arith.constant 0 : index
    %c0_4 = arith.constant 0 : index
    %3 = vector.load %arg4[%c0_3, %c0_4] : memref<1x128xf32, #tpu.memory_space<vmem>>, vector<1x128xf32>
    %4 = vector.broadcast %3 : vector<1x128xf32> to vector<8x128xf32>
    %5 = arith.addf %2, %4 : vector<8x128xf32>
    %6 = math.sin %5 : vector<8x128xf32>
    %c0_5 = arith.constant 0 : index
    %c0_6 = arith.constant 0 : index
    %7 = vector.load %arg5[%c0_5, %c0_6] : memref<8x128xf32, #tpu.memory_space<vmem>>, vector<8x128xf32>
    tpu.vector_store %arg5[%c0_5, %c0_6], %6 {strides = array<i32>} : memref<8x128xf32, #tpu.memory_space<vmem>>, vector<8x128xf32>,
    return
  }
  func.func @transform_0(%arg0: i32, %arg1: i32) -> (i32, i32) {
    %c0_i32 = arith.constant 0 : i32
    %c0_i32_0 = arith.constant 0 : i32
    return %arg1, %c0_i32 : i32, i32
  }
  func.func @transform_1(%arg0: i32, %arg1: i32) -> (i32, i32) {
    %c0_i32 = arith.constant 0 : i32
    %c0_i32_0 = arith.constant 0 : i32
    return %c0_i32, %arg0 : i32, i32
  }
  func.func @transform_2(%arg0: i32, %arg1: i32) -> (i32, i32) {
    %c0_i32 = arith.constant 0 : i32
    %c0_i32_0 = arith.constant 0 : i32
    return %c0_i32, %arg0 : i32, i32
  }
  func.func @transform_3(%arg0: i32, %arg1: i32) -> (i32, i32) {
    %c0_i32 = arith.constant 0 : i32
    return %arg1, %arg0 : i32, i32
  }
}

</mosaic_0001>

<bundles_post_ra>
// kernel: tpu_custom_call.1
= control target key start
LH: loop header
LB: loop body
LE: loop exit
PB: predicated region body
PF: predicated region fallthrough
CT: control target
= control target key end

     0   :  { %8 = vsyncpa [#allocation3], 0  ;;  %s415_s0 = inlined_call_operand.hbm [shape: f32[8,16], index: 0, kind: input, shape index: {}]   ;;  %s416_s1 = inlined_call_operand.hbm [shape: f32[16,128], index: 1, kind: input, shape index: {}]   ;;  %s417_s2 = inlined_call_operand.vmem [shape: f32[1,128], index: 2, kind: input, shape index: {}]   ;;  %s418_s3 = inlined_call_operand.hbm [shape: f32[8,128], index: 3, kind: output, shape index: {}]  }
   0x1   :  { %9 = vsyncpa [#allocation6], 0 }
   0x2   :  { %10 = vsyncpa [#allocation4], 0  ;;  %s349_s12 = smov [#allocation2]   ;;  %s350_s14 = smov [#allocation5]  }
   0x3   :  { %s17_s13 = sshll.u32 %s349_s12, 4  ;;  %s26_s15 = sshll.u32 %s350_s14, 4  ;;  %s18_s13 = int_to_ptr.vmem [resolvable:$true] %s17_s13  ;;  %s27_s15 = int_to_ptr.vmem [resolvable:$true] %s26_s15 }
   0x4   :  { %s291_s16 = scalar_lea.vmem %s18_s13, 128  ;;  %p296_p1 = scmp.lt.s32.totalorder %s18_s13, %s18_s13 }
   0x5   :  { %p292_p0 = scmp.ne.s32.totalorder %s18_s13, %s291_s16  ;;  %p297_p2 = scmp.lt.s32.totalorder %s291_s16, %s291_s16 }
   0x7   :  { %p298_p3 = por %p297_p2, %p296_p1 }
   0x9   :  { %p299_p4 = pnand %p298_p3, %p292_p0 }
   0xb   :  { %302 = shalt.err (!%p299_p4)
}
   0xc   :  { %20 = dma.hbm_to_vmem [thread:$0]  %s415_s0, 128, %s18_s13, [#allocation3]  }
   0xd   :  { %s311_s19 = scalar_lea.vmem %s27_s15, 256  ;;  %p316_p6 = scmp.lt.s32.totalorder %s27_s15, %s27_s15 }
   0xe   :  { %p312_p5 = scmp.ne.s32.totalorder %s27_s15, %s311_s19  ;;  %p317_p7 = scmp.lt.s32.totalorder %s311_s19, %s311_s19 }
  0x10   :  { %p318_p8 = por %p317_p7, %p316_p6 }
  0x12   :  { %p319_p9 = pnand %p318_p8, %p312_p5 }
  0x14   :  { %322 = shalt.err (!%p319_p9)
}
  0x15   :  { %s351_s20 = smov 128   ;;  %s352_s21 = smov 8  }
  0x16   :  { %32 = dma.hbm_to_vmem [thread:$0]  %s416_s1, 256, %s27_s15, [#allocation6], %s351_s20, %s351_s20, %s352_s21  }
  0x17   :  { %343 = dma.done.wait [#allocation3], 128  }
  0x18   :  { %344 = vsyncadd [#allocation3], 4294967168 }
  0x19   :  { %345 = dma.done.wait [#allocation6], 256  }
  0x1a   :  { %346 = vsyncadd [#allocation6], 4294967040  ;;  %v353_v0 = vmov 0.0   ;;  %vm354_vm0 = vmmov 0   ;;  %v43_v1 = vld [vmem:[#allocation5 + $0x8] sm:$0xff]  ;;  %v42_v2 = vld [vmem:[#allocation5] sm:$0xff] }
  0x1b   :  { %255 = vmatprep.subr.mxu0 %v353_v0  ;;  %259 = vmatprep.mubr.msk.f32.mxu0 %vm354_vm0, %v353_v0  ;;  %v41_v3 = vld [vmem:[#allocation2] sm:$0xff]  ;;  %vm51_vm1 = vcmask 130048   ;;  %v355_v18 = vmov 683565275   ;;  %v356_v20 = vmov 2475754826  }
  0x1c   :  { %256 = vmatpush3.msra.mxu0 %v43_v1  ;;  %v246_v4 = vld [vmem:[%s417_s2] ss:$0 sm:$0xff]  ;;  %v357_v23 = vmov 2131351028   ;;  %v358_v26 = vmov 2102212464  }
  0x1d   :  { %257 = vmatprep.subr.mxu0 %v353_v0  ;;  %v359_v29 = vmov 920167782   ;;  %v360_v32 = vmov 1326507024   ;;  %s361_s1 = smov [#allocation7]  }
  0x1e   :  { %258 = vmatpush3.msra.mxu0 %v42_v2  ;;  %s236_s2 = sshll.u32 %s361_s1, 4  ;;  %s237_s2 = int_to_ptr.vmem [resolvable:$true] %s236_s2 }
  0x1f   :  { %260 = vmatmul.mubr.msk.f32.vlgmr.msra.gmra.mxu0 %vm51_vm1, %v41_v3  ;;  %s323_s25 = scalar_lea.vmem %s237_s2, 128  ;;  %p328_p11 = scmp.lt.s32.totalorder %s237_s2, %s237_s2 }
  0x20   :  { %p324_p10 = scmp.ne.s32.totalorder %s237_s2, %s323_s25  ;;  %p329_p12 = scmp.lt.s32.totalorder %s323_s25, %s323_s25 }
  0x22   :  { %p330_p13 = por %p329_p12, %p328_p11 }
  0x24   :  { %p331_p0 = pnand %p330_p13, %p324_p10 }
  0xdf   :  { %v121_v5 = vpop.f32.mrf.mxu0 }
  0xe0   :  { %v391_v6 = vadd.f32 %v246_v4, %v121_v5 }
  0xe1   :  { %v261_v7 = vpop.f32.mrf.mxu0 }
  0xe2   :  { %v128_v8 = vand.u32 2139095040, %v391_v6  ;;  %v125_v12 = vand.u32 2147483647, %v391_v6  ;;  %vm127_vm9 = vcmp.lt.s32.totalorder %v391_v6, 0  ;;  %vm217_vm14 = vweird.f32 %v391_v6 }
  0xe4   :  { %v129_v9 = vshrl.u32 %v128_v8, 23  ;;  %v132_v15 = vand.u32 8388607, %v125_v12  ;;  %vm126_vm10 = vcmp.le.f32.partialorder %v125_v12, 0.7853982 }
  0xe6   :  { %v248_v10 = vadd.s32 4294967169, %v129_v9  ;;  %v133_v34 = vor.u32 8388608, %v132_v15 }
  0xe8   :  { %v135_v11 = vadd.s32 1, %v248_v10  ;;  %v173_v48 = vshll.u32 %v133_v34, 8 }
  0xea   :  { %vm136_vm2 = vcmp.gt.s32.totalorder %v135_v11, 0 }
  0xeb   :  { %v137_v13 = vsel %vm136_vm2, %v135_v11, 0 }
  0xec   :  { %v139_v14 = vand.u32 31, %v137_v13  ;;  %v138_v17 = vshrl.u32 %v137_v13, 5 }
  0xee   :  { %v140_v16 = vsub.s32 32, %v139_v14  ;;  %v142_v19 = vshll.u32 %v355_v18, %v139_v14  ;;  %v145_v21 = vshll.u32 %v356_v20, %v139_v14  ;;  %v148_v25 = vshll.u32 %v357_v23, %v139_v14 }
  0xef   :  { %v151_v28 = vshll.u32 %v358_v26, %v139_v14  ;;  %v154_v31 = vshll.u32 %v359_v29, %v139_v14  ;;  %vm157_vm3 = vcmp.lt.s32.totalorder %v138_v17, 1  ;;  %vm160_vm4 = vcmp.lt.s32.totalorder %v138_v17, 4 }
  0xf0   :  { %v143_v22 = vshrl.u32 %v356_v20, %v140_v16  ;;  %v146_v24 = vshrl.u32 %v357_v23, %v140_v16  ;;  %v149_v27 = vshrl.u32 %v358_v26, %v140_v16  ;;  %v152_v30 = vshrl.u32 %v359_v29, %v140_v16 }
  0xf1   :  { %v155_v33 = vshrl.u32 %v360_v32, %v140_v16  ;;  %v141_v43 = vshrl.u32 %v355_v18, %v140_v16  ;;  %vm159_vm5 = vcmp.lt.s32.totalorder %v138_v17, 3  ;;  %vm158_vm6 = vcmp.lt.s32.totalorder %v138_v17, 2 }
  0xf2   :  { %v144_v35 = vor.u32 %v143_v22, %v142_v19  ;;  %v147_v36 = vor.u32 %v146_v24, %v145_v21  ;;  %v150_v37 = vor.u32 %v149_v27, %v148_v25  ;;  %v153_v38 = vor.u32 %v152_v30, %v151_v28 }
  0xf3   :  { %v156_v39 = vor.u32 %v155_v33, %v154_v31 }
  0xf4   :  { %v162_v40 = vsel %vm160_vm4, %v150_v37, 2102212464  ;;  %v165_v41 = vsel %vm157_vm3, %v144_v35, %v147_v36  ;;  %v169_v42 = vsel %vm157_vm3, %v147_v36, %v150_v37  ;;  %v166_v44 = vsel %vm160_vm4, %v153_v38, 920167782 }
  0xf5   :  { %v170_v45 = vsel %vm160_vm4, %v156_v39, 1326507024  ;;  %v167_v46 = vsel %vm159_vm5, %v150_v37, %v166_v44  ;;  %v161_v49 = vsel %vm157_vm3, %v141_v43, %v144_v35  ;;  %v163_v50 = vsel %vm159_vm5, %v147_v36, %v162_v40 }
  0xf6   :  { %v171_v47 = vsel %vm159_vm5, %v153_v38, %v170_v45  ;;  %v168_v51 = vsel %vm158_vm6, %v165_v41, %v167_v46  ;;  %v164_v57 = vsel %vm158_vm6, %v161_v49, %v163_v50 }
  0xf7   :  { %v172_v52 = vsel %vm158_vm6, %v169_v42, %v171_v47  ;;  %v400_v55 = vmul.u32.u64.low %v173_v48, %v168_v51  ;;  %v401_v56 = vmul.u32.u64.high %v173_v48, %v168_v51, %v400_v55  ;;  %v180_v59 = vmul.u32 %v173_v48, %v164_v57 }
  0xf8   :  { %v397_v53 = vmul.u32.u64.low %v173_v48, %v172_v52  ;;  %v398_v54 = vmul.u32.u64.high %v173_v48, %v172_v52, %v397_v53 }
  0xf9   :  { %v183_v58 = vadd.s32 1, %v401_v56 }
  0xfa   :  { %vm182_vm7 = vc.u32 %v398_v54, %v400_v55  ;;  %v181_v8 = vadd.s32 %v400_v55, %v398_v54 }
  0xfb   :  { %v184_v60 = vsel %vm182_vm7, %v183_v58, %v401_v56 }
  0xfc   :  { %v185_v61 = vadd.s32 %v184_v60, %v180_v59 }
  0xfe   :  { %v186_v62 = vadd.s32 536870912, %v185_v61 }
 0x100   :  { %v187_v63 = vshrl.u32 %v186_v62, 30 }
 0x102   :  { %v188_v0 = vshll.u32 %v187_v63, 30  ;;  %v211_v22 = vsub.s32 4, %v187_v63 }
 0x104   :  { %v189_v1 = vsub.s32 %v185_v61, %v188_v0  ;;  %v212_v25 = vsel %vm127_vm9, %v211_v22, %v187_v63 }
 0x105   :  { %v214_v26 = vsel %vm126_vm10, 0, %v212_v25 }
 0x106   :  { %v191_v2 = vsub.s32 0, %v189_v1  ;;  %v218_v27 = vadd.s32 3, %v214_v26 }
 0x108   :  { %v249_v3 = vmin.u32 %v191_v2, %v189_v1  ;;  %v219_v28 = vand.u32 3, %v218_v27 }
 0x10a   :  { %v193_v4 = vclz %v249_v3  ;;  %vm224_vm11 = vcmp.eq.s32.totalorder %v219_v28, 2  ;;  %vm221_vm12 = vcmp.eq.s32.totalorder %v219_v28, 0  ;;  %vm220_vm13 = vcmp.lt.s32.totalorder %v219_v28, 2 }
 0x10c   :  { %v250_v5 = vadd.s32 4294967294, %v193_v4 }
 0x10e   :  { %vm251_vm8 = vcmp.lt.s32.totalorder %v250_v5, 0 }
 0x10f   :  { %v196_v7 = vsel %vm251_vm8, 0, %v250_v5 }
 0x110   :  { %v197_v9 = vsub.s32 32, %v196_v7  ;;  %v201_v10 = vsub.s32 4294967266, %v196_v7  ;;  %v198_v11 = vshll.u32 %v189_v1, %v196_v7 }
 0x112   :  { %v199_v13 = vshrl.u32 %v181_v8, %v197_v9  ;;  %v202_v14 = vadd.s32 127, %v201_v10 }
 0x114   :  { %v200_v15 = vor.u32 %v199_v13, %v198_v11  ;;  %v203_v16 = vshll.u32 %v202_v14, 23 }
 0x116   :  { %v204_v17 = vor.u32 4788187, %v203_v16  ;;  %v207_v19 = vcvt.s32.f32 %v200_v15 }
 0x118   :  { %v205_v18 = vand.u32 2147483647, %v204_v17 }
 0x11a   :  { %v208_v20 = vmul.f32 %v207_v19, %v205_v18 }
 0x11c   :  { %v209_v21 = vxor.u32 2147483648, %v208_v20 }
 0x11e   :  { %v210_v23 = vsel %vm127_vm9, %v209_v21, %v208_v20 }
 0x11f   :  { %v213_v24 = vsel %vm126_vm10, %v391_v6, %v210_v23 }
 0x120   :  { %279 = vcosq.f32 %v213_v24 }
 0x121   :  { %281 = vsinq.f32 %v213_v24 }
 0x12d   :  { %v280_v29 = vpop.eup %279 }
 0x12e   :  { %v282_v30 = vpop.eup %281  ;;  %v225_v31 = vxor.u32 2147483648, %v280_v29 }
 0x12f   :  { %v222_v32 = vxor.u32 2147483648, %v282_v30 }
 0x130   :  { %v226_v33 = vsel %vm224_vm11, %v225_v31, %v282_v30 }
 0x131   :  { %v223_v34 = vsel %vm221_vm12, %v280_v29, %v222_v32 }
 0x132   :  { %v227_v12 = vsel %vm220_vm13, %v223_v34, %v226_v33 }
 0x133   :  { %v228_v35 = vsel %vm217_vm14, nan, %v227_v12 }
 0x134   :  { %229 = vst [vmem:[#allocation7] sm:$0xff] %v228_v35 }
 0x135   :  { %334 = shalt.err (!%p331_p0)
}
 0x136   :  { %239 = dma.vmem_to_hbm [thread:$0]  %s237_s2, 128, %s418_s3, [#allocation4]  }
 0x137   :  { %347 = dma.done.wait [#allocation4], 128  }
 0x138   :  { %348 = vsyncadd [#allocation4], 4294967168 }
 0x139   :  { %243 = vsyncpa [#allocation3], 1 }
 0x13a   :  { %244 = vsyncpa [#allocation6], 1 }
 0x13b   :  { %245 = vsyncpa [#allocation4], 1 }

</bundles_post_ra>
